<compile_context>
chip_gen: v5e
topology: v5e:2x2
jax: 0.10.0
libtpu: 0.0.40
codegen_flags: <defaults>
</compile_context>

<pallas_src>
import functools

import jax
import jax.numpy as jnp
import numpy as np
from jax.experimental import pallas as pl
from jax.experimental.pallas import tpu as pltpu


def _round_up(n: int, m: int) -> int:
    return ((n + m - 1) // m) * m


def _ln_epilogue(y_acc, res_ref, b_ref, gamma_ref, beta_ref, out_ref, eps):
    """bias + residual + LayerNorm (f32 math), single-pass mean/variance."""
    y = y_acc + b_ref[...].astype(jnp.float32) + res_ref[...].astype(jnp.float32)
    mu = jnp.mean(y, axis=-1, keepdims=True)
    ms = jnp.mean(y * y, axis=-1, keepdims=True)
    var = jnp.maximum(ms - mu * mu, 0.0)        # guard fp cancellation
    inv = jax.lax.rsqrt(var + eps)
    out = (y - mu) * inv * gamma_ref[...].astype(jnp.float32) \
          + beta_ref[...].astype(jnp.float32)
    out_ref[...] = out.astype(out_ref.dtype)


def _dense_add_ln_kernel(x_ref, res_ref, w_ref, b_ref, gamma_ref, beta_ref,
                         out_ref, acc_ref, *, eps: float, n_k: int):
    # MXU matmul with low-precision operands, f32 accumulation.
    xw = jnp.dot(x_ref[...].astype(w_ref.dtype), w_ref[...],
                 preferred_element_type=jnp.float32)

    if n_k == 1:
        # Full reduction in one step: skip the accumulator round-trip entirely.
        _ln_epilogue(xw, res_ref, b_ref, gamma_ref, beta_ref, out_ref, eps)
    else:
        k = pl.program_id(1)

        @pl.when(k == 0)
        def _():
            acc_ref[...] = xw

        @pl.when(k > 0)
        def _():
            acc_ref[...] += xw

        @pl.when(k == n_k - 1)
        def _():
            _ln_epilogue(acc_ref[...], res_ref, b_ref, gamma_ref, beta_ref,
                         out_ref, eps)


def _choose_row_tile(n_rows: int, block_rows: int) -> int:
    tm = min(block_rows, _round_up(n_rows, 8))
    # v7x megacore: make sure the 'parallel' row axis has >= 2 steps when possible.
    if pl.cdiv(n_rows, tm) < 2 and n_rows > 8:
        tm = max(8, _round_up(pl.cdiv(n_rows, 2), 8))
    return tm


def _choose_k_tile(k_dim: int, block_k, max_resident_k: int = 2048) -> int:
    if block_k is not None:
        tk = int(block_k)
    elif k_dim <= max_resident_k:
        tk = k_dim
    else:
        tk = k_dim
        for cand in (2048, 1536, 1024, 512, 256, 128):
            if k_dim % cand == 0:
                tk = cand
                break
    # A partial K block would feed garbage into the reduction; require an exact,
    # lane-aligned tiling or fall back to a fully resident weight.
    if tk != k_dim and (k_dim % tk != 0 or tk % 128 != 0):
        tk = k_dim
    return tk


def dense_add_layernorm(x, residual, w_t, b, gamma, beta, *, eps,
                        block_rows: int = 256, block_k=None,
                        vmem_limit_bytes=None):
    """LayerNorm(x @ w_t + b + residual), fused in a single Pallas kernel.

    x:        (..., I)   activations
    residual: (..., H)
    w_t:      (I, H)     pre-transposed (typically bf16) weight: x @ w_t == x @ W_pt.T
    b, gamma, beta: (1, H) f32
    """
    I = x.shape[-1]
    H = w_t.shape[-1]
    lead = x.shape[:-1]
    R = 1
    for d in lead:
        R *= int(d)

    x2 = x.reshape(R, I)
    r2 = residual.reshape(R, H)

    tm = _choose_row_tile(R, block_rows)
    tk = _choose_k_tile(I, block_k)
    n_rows = pl.cdiv(R, tm)
    n_k = I // tk

    if vmem_limit_bytes is None:
        # Conservative footprint (weight counted double-buffered) + headroom.
        est = (2 * tm * tk * x2.dtype.itemsize          # activation tile (2 bufs)
               + 2 * tm * H * r2.dtype.itemsize         # residual tile
               + 2 * tm * H * x.dtype.itemsize          # output tile
               + 2 * tk * H * w_t.dtype.itemsize        # weight tile
               + 3 * H * 4                              # bias / gamma / beta
               + tm * H * 4)                            # f32 accumulator scratch
        vmem_limit_bytes = int(est * 1.2) + (16 << 20)

    kernel = functools.partial(_dense_add_ln_kernel, eps=eps, n_k=n_k)
    out_shape = jax.ShapeDtypeStruct((R, H), x.dtype)

    def _call(single_buffer_consts: bool):
        def spec(shape, index_map, constant=False):
            if constant and single_buffer_consts:
                # Constant block over the whole grid -> no point double-buffering.
                return pl.BlockSpec(shape, index_map, pipeline_mode=pl.Buffered(1))
            return pl.BlockSpec(shape, index_map)

        grid_spec = pltpu.PrefetchScalarGridSpec(
            num_scalar_prefetch=0,
            grid=(n_rows, n_k),
            in_specs=[
                spec((tm, tk), lambda i, k: (i, k)),                      # activations
                spec((tm, H), lambda i, k: (i, 0)),                       # residual
                spec((tk, H), lambda i, k: (k, 0), constant=(n_k == 1)),  # weight
                spec((1, H), lambda i, k: (0, 0), constant=True),         # bias
                spec((1, H), lambda i, k: (0, 0), constant=True),         # LN gamma
                spec((1, H), lambda i, k: (0, 0), constant=True),         # LN beta
            ],
            out_specs=pl.BlockSpec((tm, H), lambda i, k: (i, 0)),
            scratch_shapes=[pltpu.VMEM((tm, H), jnp.float32)],
        )
        return pl.pallas_call(
            kernel,
            out_shape=out_shape,
            grid_spec=grid_spec,
            compiler_params=pltpu.CompilerParams(
                dimension_semantics=("parallel", "arbitrary"),
                vmem_limit_bytes=vmem_limit_bytes,
            ),
        )(x2, r2, w_t, b, gamma, beta)

    try:
        out = _call(True)
    except Exception:
        # Fallback if single-buffered (Buffered(1)) constants are rejected; only
        # effective in eager dispatch, which is how this wrapper is exercised here.
        out = _call(False)

    return out.reshape(*lead, H)


def prepare_params(raw, *, entity_aware_output: bool, compute_dtype=jnp.bfloat16):
    """One-time parameter prep (transpose + MXU-dtype cast) kept OUT of the call path."""
    H = raw["dense_w"].shape[0]

    def dense(wk, bk):
        return (jnp.asarray(raw[wk]).astype(compute_dtype).T,          # (I, H) bf16
                jnp.asarray(raw[bk], jnp.float32).reshape(1, H))

    def ln(gk, bk):
        return (jnp.asarray(raw[gk], jnp.float32).reshape(1, H),
                jnp.asarray(raw[bk], jnp.float32).reshape(1, H))

    w, b = dense("dense_w", "dense_b")
    gamma, beta = ln("ln_gamma", "ln_beta")
    p = {"w": w, "b": b, "gamma": gamma, "beta": beta}
    if entity_aware_output:
        ew, eb = dense("entity_dense_w", "entity_dense_b")
        eg, ebt = ln("entity_ln_gamma", "entity_ln_beta")
        p.update(entity_w=ew, entity_b=eb, entity_gamma=eg, entity_beta=ebt)
    return p


def entity_aware_bert_output(token_intermediate, entity_intermediate,
                             word_attention, entity_attention,
                             params, *, entity_aware_output: bool,
                             eps: float = 1e-12, block_rows: int = 256,
                             vmem_limit_bytes=None):
    # TODO(synk): dropout is identity in eval mode; training dropout not implemented.
    if entity_aware_output:
        token_out = dense_add_layernorm(
            token_intermediate, word_attention,
            params["w"], params["b"], params["gamma"], params["beta"],
            eps=eps, block_rows=block_rows, vmem_limit_bytes=vmem_limit_bytes)
        entity_out = dense_add_layernorm(
            entity_intermediate, entity_attention,
            params["entity_w"], params["entity_b"],
            params["entity_gamma"], params["entity_beta"],
            eps=eps, block_rows=block_rows, vmem_limit_bytes=vmem_limit_bytes)
        return token_out, entity_out

    # Shared weights: merge token + entity rows into ONE launch so the weight is
    # DMA'd / resident in VMEM once and launch overhead is paid once.
    I = token_intermediate.shape[-1]
    H = word_attention.shape[-1]
    t_lead = token_intermediate.shape[:-1]
    e_lead = entity_intermediate.shape[:-1]
    rt = int(np.prod(t_lead)) if t_lead else 1
    re = int(np.prod(e_lead)) if e_lead else 1

    x_all = jnp.concatenate([token_intermediate.reshape(rt, I),
                             entity_intermediate.reshape(re, I)], axis=0)
    res_all = jnp.concatenate([word_attention.reshape(rt, H),
                               entity_attention.reshape(re, H)], axis=0)
    out_all = dense_add_layernorm(
        x_all, res_all, params["w"], params["b"], params["gamma"], params["beta"],
        eps=eps, block_rows=block_rows, vmem_limit_bytes=vmem_limit_bytes)
    token_out = out_all[:rt].reshape(*t_lead, H)
    entity_out = out_all[rt:].reshape(*e_lead, H)
    return token_out, entity_out


def _reference(token_int, entity_int, word_attn, entity_attn, raw, *,
               entity_aware_output: bool, eps: float = 1e-12):
    def ln(x, g, b):
        mu = jnp.mean(x, -1, keepdims=True)
        var = jnp.mean((x - mu) ** 2, -1, keepdims=True)
        return (x - mu) / jnp.sqrt(var + eps) * g + b

    t = token_int @ raw["dense_w"].T + raw["dense_b"]
    t = ln(t + word_attn, raw["ln_gamma"], raw["ln_beta"])
    if entity_aware_output:
        e = entity_int @ raw["entity_dense_w"].T + raw["entity_dense_b"]
        e = ln(e + entity_attn, raw["entity_ln_gamma"], raw["entity_ln_beta"])
    else:
        e = entity_int @ raw["dense_w"].T + raw["dense_b"]
        e = ln(e + entity_attn, raw["ln_gamma"], raw["ln_beta"])
    return t, e


if __name__ == "__main__":
    # batch=2, token seq=8, entity (query) seq=8, intermediate=64, hidden=32
    B, T, E, I, H = 2, 8, 8, 64, 32
    eps = 1e-12

    key = jax.random.PRNGKey(0)
    ks = jax.random.split(key, 10)
    s = 0.1
    raw = {
        "dense_w": s * jax.random.normal(ks[0], (H, I), jnp.float32),
        "dense_b": s * jax.random.normal(ks[1], (H,), jnp.float32),
        "ln_gamma": jnp.ones((H,), jnp.float32),
        "ln_beta": jnp.zeros((H,), jnp.float32),
        "entity_dense_w": s * jax.random.normal(ks[2], (H, I), jnp.float32),
        "entity_dense_b": s * jax.random.normal(ks[3], (H,), jnp.float32),
        "entity_ln_gamma": 1.0 + s * jax.random.normal(ks[4], (H,), jnp.float32),
        "entity_ln_beta": s * jax.random.normal(ks[5], (H,), jnp.float32),
    }

    token_int = jax.random.normal(ks[6], (B, T, I), jnp.float32)
    entity_int = jax.random.normal(ks[7], (B, E, I), jnp.float32)
    word_attn = jax.random.normal(ks[8], (B, T, H), jnp.float32)
    entity_attn = jax.random.normal(ks[9], (B, E, H), jnp.float32)

    # bf16 MXU operands -> looser tolerance than the pure-f32 reference.
    ATOL = RTOL = 2e-2

    # Path 1: entity_aware_output=True (separate entity dense / LayerNorm).
    params = prepare_params(raw, entity_aware_output=True)
    tok_out, ent_out = entity_aware_bert_output(
        token_int, entity_int, word_attn, entity_attn, params,
        entity_aware_output=True, eps=eps)
    tok_out = jax.block_until_ready(tok_out)
    ent_out = jax.block_until_ready(ent_out)
    ref_tok, ref_ent = _reference(token_int, entity_int, word_attn, entity_attn,
                                  raw, entity_aware_output=True, eps=eps)
    np.testing.assert_allclose(np.asarray(tok_out), np.asarray(ref_tok),
                               atol=ATOL, rtol=RTOL)
    np.testing.assert_allclose(np.asarray(ent_out), np.asarray(ref_ent),
                               atol=ATOL, rtol=RTOL)

    # Path 2: entity_aware_output=False (shared weights, merged single launch).
    params_shared = prepare_params(raw, entity_aware_output=False)
    tok_out2, ent_out2 = entity_aware_bert_output(
        token_int, entity_int, word_attn, entity_attn, params_shared,
        entity_aware_output=False, eps=eps)
    tok_out2 = jax.block_until_ready(tok_out2)
    ent_out2 = jax.block_until_ready(ent_out2)
    ref_tok2, ref_ent2 = _reference(token_int, entity_int, word_attn, entity_attn,
                                    raw, entity_aware_output=False, eps=eps)
    np.testing.assert_allclose(np.asarray(tok_out2), np.asarray(ref_tok2),
                               atol=ATOL, rtol=RTOL)
    np.testing.assert_allclose(np.asarray(ent_out2), np.asarray(ref_ent2),
                               atol=ATOL, rtol=RTOL)

    print("KERNEL_OK")
</pallas_src>

<mosaic_0001>
module attributes {stable_mosaic.version = 11 : i64} {
  func.func @_dense_add_ln_kernel(%arg0: i32, %arg1: i32, %arg2: memref<8x64xf32, #tpu.memory_space<vmem>>, %arg3: memref<8x32xf32, #tpu.memory_space<vmem>>, %arg4: memref<64x32xbf16, #tpu.memory_space<vmem>>, %arg5: memref<1x32xf32, #tpu.memory_space<vmem>>, %arg6: memref<1x32xf32, #tpu.memory_space<vmem>>, %arg7: memref<1x32xf32, #tpu.memory_space<vmem>>, %arg8: memref<8x32xf32, #tpu.memory_space<vmem>>, %arg9: memref<8x32xf32, #tpu.memory_space<vmem>>) attributes {dimension_semantics = [#tpu.dimension_semantics<parallel>, #tpu.dimension_semantics<arbitrary>], iteration_bounds = array<i64: 2, 1>, scalar_prefetch = 0 : i64, scratch_operands = 1 : i64, tpu.core_type = #tpu.core_type<tc>, window_params = [{transform_indices = @transform_0, window_bounds = array<i64: 8, 64>}, {transform_indices = @transform_1, window_bounds = array<i64: 8, 32>}, {pipeline_mode = #tpu.pipeline_mode<synchronous>, transform_indices = @transform_2, window_bounds = array<i64: 64, 32>}, {pipeline_mode = #tpu.pipeline_mode<synchronous>, transform_indices = @transform_3, window_bounds = array<i64: 1, 32>}, {pipeline_mode = #tpu.pipeline_mode<synchronous>, transform_indices = @transform_4, window_bounds = array<i64: 1, 32>}, {pipeline_mode = #tpu.pipeline_mode<synchronous>, transform_indices = @transform_5, window_bounds = array<i64: 1, 32>}, {transform_indices = @transform_6, window_bounds = array<i64: 8, 32>}]} {
    %c0 = arith.constant 0 : index
    %c0_0 = arith.constant 0 : index
    %0 = vector.load %arg2[%c0, %c0_0] : memref<8x64xf32, #tpu.memory_space<vmem>>, vector<8x64xf32>
    %1 = arith.truncf %0 : vector<8x64xf32> to vector<8x64xbf16>
    %c0_1 = arith.constant 0 : index
    %c0_2 = arith.constant 0 : index
    %2 = vector.load %arg4[%c0_1, %c0_2] : memref<64x32xbf16, #tpu.memory_space<vmem>>, vector<64x32xbf16>
    %cst = arith.constant dense<0.000000e+00> : vector<8x32xf32>
    %3 = tpu.matmul %1, %2, %cst {dimension_numbers = #tpu.dot_dimension_numbers<[1], [0], [0], [1], [0, 0, 1, 1], [], []>} : vector<8x64xbf16>, vector<64x32xbf16>, vector<8x32xf32> -> vector<8x32xf32>
    %c0_3 = arith.constant 0 : index
    %c0_4 = arith.constant 0 : index
    %4 = vector.load %arg5[%c0_3, %c0_4] : memref<1x32xf32, #tpu.memory_space<vmem>>, vector<1x32xf32>
    %5 = vector.broadcast %4 : vector<1x32xf32> to vector<8x32xf32>
    %6 = arith.addf %3, %5 : vector<8x32xf32>
    %c0_5 = arith.constant 0 : index
    %c0_6 = arith.constant 0 : index
    %7 = vector.load %arg3[%c0_5, %c0_6] : memref<8x32xf32, #tpu.memory_space<vmem>>, vector<8x32xf32>
    %8 = arith.addf %6, %7 : vector<8x32xf32>
    %cst_7 = arith.constant dense<0.000000e+00> : vector<8xf32>
    %9 = vector.multi_reduction <add>, %8, %cst_7 [1] : vector<8x32xf32> to vector<8xf32>
    %10 = vector.shape_cast %9 : vector<8xf32> to vector<8x1xf32>
    %cst_8 = arith.constant 3.200000e+01 : f32
    %11 = vector.broadcast %cst_8 : f32 to vector<8x1xf32>
    %12 = arith.divf %10, %11 : vector<8x1xf32>
    %13 = arith.mulf %8, %8 : vector<8x32xf32>
    %cst_9 = arith.constant dense<0.000000e+00> : vector<8xf32>
    %14 = vector.multi_reduction <add>, %13, %cst_9 [1] : vector<8x32xf32> to vector<8xf32>
    %15 = vector.shape_cast %14 : vector<8xf32> to vector<8x1xf32>
    %cst_10 = arith.constant 3.200000e+01 : f32
    %16 = vector.broadcast %cst_10 : f32 to vector<8x1xf32>
    %17 = arith.divf %15, %16 : vector<8x1xf32>
    %18 = arith.mulf %12, %12 : vector<8x1xf32>
    %19 = arith.subf %17, %18 : vector<8x1xf32>
    %cst_11 = arith.constant 0.000000e+00 : f32
    %20 = vector.broadcast %cst_11 : f32 to vector<8x1xf32>
    %21 = arith.maximumf %19, %20 : vector<8x1xf32>
    %cst_12 = arith.constant 9.99999996E-13 : f32
    %22 = vector.broadcast %cst_12 : f32 to vector<8x1xf32>
    %23 = arith.addf %21, %22 : vector<8x1xf32>
    %24 = math.rsqrt %23 : vector<8x1xf32>
    %25 = vector.broadcast %12 : vector<8x1xf32> to vector<8x32xf32>
    %26 = arith.subf %8, %25 : vector<8x32xf32>
    %27 = vector.broadcast %24 : vector<8x1xf32> to vector<8x32xf32>
    %28 = arith.mulf %26, %27 : vector<8x32xf32>
    %c0_13 = arith.constant 0 : index
    %c0_14 = arith.constant 0 : index
    %29 = vector.load %arg6[%c0_13, %c0_14] : memref<1x32xf32, #tpu.memory_space<vmem>>, vector<1x32xf32>
    %30 = vector.broadcast %29 : vector<1x32xf32> to vector<8x32xf32>
    %31 = arith.mulf %28, %30 : vector<8x32xf32>
    %c0_15 = arith.constant 0 : index
    %c0_16 = arith.constant 0 : index
    %32 = vector.load %arg7[%c0_15, %c0_16] : memref<1x32xf32, #tpu.memory_space<vmem>>, vector<1x32xf32>
    %33 = vector.broadcast %32 : vector<1x32xf32> to vector<8x32xf32>
    %34 = arith.addf %31, %33 : vector<8x32xf32>
    %c0_17 = arith.constant 0 : index
    %c0_18 = arith.constant 0 : index
    %35 = vector.load %arg8[%c0_17, %c0_18] : memref<8x32xf32, #tpu.memory_space<vmem>>, vector<8x32xf32>
    tpu.vector_store %arg8[%c0_17, %c0_18], %34 {strides = array<i32>} : memref<8x32xf32, #tpu.memory_space<vmem>>, vector<8x32xf32>,
    return
  }
  func.func @transform_0(%arg0: i32, %arg1: i32) -> (i32, i32) {
    %c0_i32 = arith.constant 0 : i32
    return %arg0, %arg1 : i32, i32
  }
  func.func @transform_1(%arg0: i32, %arg1: i32) -> (i32, i32) {
    %c0_i32 = arith.constant 0 : i32
    %c0_i32_0 = arith.constant 0 : i32
    return %arg0, %c0_i32 : i32, i32
  }
  func.func @transform_2(%arg0: i32, %arg1: i32) -> (i32, i32) {
    %c0_i32 = arith.constant 0 : i32
    %c0_i32_0 = arith.constant 0 : i32
    return %arg1, %c0_i32 : i32, i32
  }
  func.func @transform_3(%arg0: i32, %arg1: i32) -> (i32, i32) {
    %c0_i32 = arith.constant 0 : i32
    %c0_i32_0 = arith.constant 0 : i32
    %c0_i32_1 = arith.constant 0 : i32
    return %c0_i32, %c0_i32_0 : i32, i32
  }
  func.func @transform_4(%arg0: i32, %arg1: i32) -> (i32, i32) {
    %c0_i32 = arith.constant 0 : i32
    %c0_i32_0 = arith.constant 0 : i32
    %c0_i32_1 = arith.constant 0 : i32
    return %c0_i32, %c0_i32_0 : i32, i32
  }
  func.func @transform_5(%arg0: i32, %arg1: i32) -> (i32, i32) {
    %c0_i32 = arith.constant 0 : i32
    %c0_i32_0 = arith.constant 0 : i32
    %c0_i32_1 = arith.constant 0 : i32
    return %c0_i32, %c0_i32_0 : i32, i32
  }
  func.func @transform_6(%arg0: i32, %arg1: i32) -> (i32, i32) {
    %c0_i32 = arith.constant 0 : i32
    %c0_i32_0 = arith.constant 0 : i32
    return %arg0, %c0_i32 : i32, i32
  }
}

module attributes {stable_mosaic.version = 11 : i64} {
  func.func @_dense_add_ln_kernel(%arg0: i32, %arg1: i32, %arg2: memref<8x64xf32, #tpu.memory_space<vmem>>, %arg3: memref<8x32xf32, #tpu.memory_space<vmem>>, %arg4: memref<64x32xbf16, #tpu.memory_space<vmem>>, %arg5: memref<1x32xf32, #tpu.memory_space<vmem>>, %arg6: memref<1x32xf32, #tpu.memory_space<vmem>>, %arg7: memref<1x32xf32, #tpu.memory_space<vmem>>, %arg8: memref<8x32xf32, #tpu.memory_space<vmem>>, %arg9: memref<8x32xf32, #tpu.memory_space<vmem>>) attributes {dimension_semantics = [#tpu.dimension_semantics<parallel>, #tpu.dimension_semantics<arbitrary>], iteration_bounds = array<i64: 2, 1>, scalar_prefetch = 0 : i64, scratch_operands = 1 : i64, tpu.core_type = #tpu.core_type<tc>, window_params = [{transform_indices = @transform_0, window_bounds = array<i64: 8, 64>}, {transform_indices = @transform_1, window_bounds = array<i64: 8, 32>}, {transform_indices = @transform_2, window_bounds = array<i64: 64, 32>}, {pipeline_mode = #tpu.pipeline_mode<synchronous>, transform_indices = @transform_3, window_bounds = array<i64: 1, 32>}, {pipeline_mode = #tpu.pipeline_mode<synchronous>, transform_indices = @transform_4, window_bounds = array<i64: 1, 32>}, {pipeline_mode = #tpu.pipeline_mode<synchronous>, transform_indices = @transform_5, window_bounds = array<i64: 1, 32>}, {transform_indices = @transform_6, window_bounds = array<i64: 8, 32>}]} {
    %c0 = arith.constant 0 : index
    %c0_0 = arith.constant 0 : index
    %0 = vector.load %arg2[%c0, %c0_0] : memref<8x64xf32, #tpu.memory_space<vmem>>, vector<8x64xf32>
    %1 = arith.truncf %0 : vector<8x64xf32> to vector<8x64xbf16>
    %c0_1 = arith.constant 0 : index
    %c0_2 = arith.constant 0 : index
    %2 = vector.load %arg4[%c0_1, %c0_2] : memref<64x32xbf16, #tpu.memory_space<vmem>>, vector<64x32xbf16>
    %cst = arith.constant dense<0.000000e+00> : vector<8x32xf32>
    %3 = tpu.matmul %1, %2, %cst {dimension_numbers = #tpu.dot_dimension_numbers<[1], [0], [0], [1], [0, 0, 1, 1], [], []>} : vector<8x64xbf16>, vector<64x32xbf16>, vector<8x32xf32> -> vector<8x32xf32>
    %c0_3 = arith.constant 0 : index
    %c0_4 = arith.constant 0 : index
    %4 = vector.load %arg5[%c0_3, %c0_4] : memref<1x32xf32, #tpu.memory_space<vmem>>, vector<1x32xf32>
    %5 = vector.broadcast %4 : vector<1x32xf32> to vector<8x32xf32>
    %6 = arith.addf %3, %5 : vector<8x32xf32>
    %c0_5 = arith.constant 0 : index
    %c0_6 = arith.constant 0 : index
    %7 = vector.load %arg3[%c0_5, %c0_6] : memref<8x32xf32, #tpu.memory_space<vmem>>, vector<8x32xf32>
    %8 = arith.addf %6, %7 : vector<8x32xf32>
    %cst_7 = arith.constant dense<0.000000e+00> : vector<8xf32>
    %9 = vector.multi_reduction <add>, %8, %cst_7 [1] : vector<8x32xf32> to vector<8xf32>
    %10 = vector.shape_cast %9 : vector<8xf32> to vector<8x1xf32>
    %cst_8 = arith.constant 3.200000e+01 : f32
    %11 = vector.broadcast %cst_8 : f32 to vector<8x1xf32>
    %12 = arith.divf %10, %11 : vector<8x1xf32>
    %13 = arith.mulf %8, %8 : vector<8x32xf32>
    %cst_9 = arith.constant dense<0.000000e+00> : vector<8xf32>
    %14 = vector.multi_reduction <add>, %13, %cst_9 [1] : vector<8x32xf32> to vector<8xf32>
    %15 = vector.shape_cast %14 : vector<8xf32> to vector<8x1xf32>
    %cst_10 = arith.constant 3.200000e+01 : f32
    %16 = vector.broadcast %cst_10 : f32 to vector<8x1xf32>
    %17 = arith.divf %15, %16 : vector<8x1xf32>
    %18 = arith.mulf %12, %12 : vector<8x1xf32>
    %19 = arith.subf %17, %18 : vector<8x1xf32>
    %cst_11 = arith.constant 0.000000e+00 : f32
    %20 = vector.broadcast %cst_11 : f32 to vector<8x1xf32>
    %21 = arith.maximumf %19, %20 : vector<8x1xf32>
    %cst_12 = arith.constant 9.99999996E-13 : f32
    %22 = vector.broadcast %cst_12 : f32 to vector<8x1xf32>
    %23 = arith.addf %21, %22 : vector<8x1xf32>
    %24 = math.rsqrt %23 : vector<8x1xf32>
    %25 = vector.broadcast %12 : vector<8x1xf32> to vector<8x32xf32>
    %26 = arith.subf %8, %25 : vector<8x32xf32>
    %27 = vector.broadcast %24 : vector<8x1xf32> to vector<8x32xf32>
    %28 = arith.mulf %26, %27 : vector<8x32xf32>
    %c0_13 = arith.constant 0 : index
    %c0_14 = arith.constant 0 : index
    %29 = vector.load %arg6[%c0_13, %c0_14] : memref<1x32xf32, #tpu.memory_space<vmem>>, vector<1x32xf32>
    %30 = vector.broadcast %29 : vector<1x32xf32> to vector<8x32xf32>
    %31 = arith.mulf %28, %30 : vector<8x32xf32>
    %c0_15 = arith.constant 0 : index
    %c0_16 = arith.constant 0 : index
    %32 = vector.load %arg7[%c0_15, %c0_16] : memref<1x32xf32, #tpu.memory_space<vmem>>, vector<1x32xf32>
    %33 = vector.broadcast %32 : vector<1x32xf32> to vector<8x32xf32>
    %34 = arith.addf %31, %33 : vector<8x32xf32>
    %c0_17 = arith.constant 0 : index
    %c0_18 = arith.constant 0 : index
    %35 = vector.load %arg8[%c0_17, %c0_18] : memref<8x32xf32, #tpu.memory_space<vmem>>, vector<8x32xf32>
    tpu.vector_store %arg8[%c0_17, %c0_18], %34 {strides = array<i32>} : memref<8x32xf32, #tpu.memory_space<vmem>>, vector<8x32xf32>,
    return
  }
  func.func @transform_0(%arg0: i32, %arg1: i32) -> (i32, i32) {
    %c0_i32 = arith.constant 0 : i32
    return %arg0, %arg1 : i32, i32
  }
  func.func @transform_1(%arg0: i32, %arg1: i32) -> (i32, i32) {
    %c0_i32 = arith.constant 0 : i32
    %c0_i32_0 = arith.constant 0 : i32
    return %arg0, %c0_i32 : i32, i32
  }
  func.func @transform_2(%arg0: i32, %arg1: i32) -> (i32, i32) {
    %c0_i32 = arith.constant 0 : i32
    %c0_i32_0 = arith.constant 0 : i32
    return %arg1, %c0_i32 : i32, i32
  }
  func.func @transform_3(%arg0: i32, %arg1: i32) -> (i32, i32) {
    %c0_i32 = arith.constant 0 : i32
    %c0_i32_0 = arith.constant 0 : i32
    %c0_i32_1 = arith.constant 0 : i32
    return %c0_i32, %c0_i32_0 : i32, i32
  }
  func.func @transform_4(%arg0: i32, %arg1: i32) -> (i32, i32) {
    %c0_i32 = arith.constant 0 : i32
    %c0_i32_0 = arith.constant 0 : i32
    %c0_i32_1 = arith.constant 0 : i32
    return %c0_i32, %c0_i32_0 : i32, i32
  }
  func.func @transform_5(%arg0: i32, %arg1: i32) -> (i32, i32) {
    %c0_i32 = arith.constant 0 : i32
    %c0_i32_0 = arith.constant 0 : i32
    %c0_i32_1 = arith.constant 0 : i32
    return %c0_i32, %c0_i32_0 : i32, i32
  }
  func.func @transform_6(%arg0: i32, %arg1: i32) -> (i32, i32) {
    %c0_i32 = arith.constant 0 : i32
    %c0_i32_0 = arith.constant 0 : i32
    return %arg0, %c0_i32 : i32, i32
  }
}

</mosaic_0001>

<bundles_post_ra>
// kernel: tpu_custom_call.1
= control target key start
LH: loop header
LB: loop body
LE: loop exit
PB: predicated region body
PF: predicated region fallthrough
CT: control target
= control target key end

     0   :  { %11 = vsyncpa [#allocation4], 0  ;;  %s861_s0 = inlined_call_operand.vmem [shape: f32[16,64], index: 0, kind: input, shape index: {}]   ;;  %s862_s1 = inlined_call_operand.vmem [shape: f32[16,32], index: 1, kind: input, shape index: {}]   ;;  %s863_s2 = inlined_call_operand.vmem [shape: bf16[64,32], index: 2, kind: input, shape index: {}]   ;;  %s864_s3 = inlined_call_operand.vmem [shape: f32[1,32], index: 3, kind: input, shape index: {}]   ;;  %s865_s4 = inlined_call_operand.vmem [shape: f32[1,32], index: 4, kind: input, shape index: {}]   ;;  %s866_s5 = inlined_call_operand.vmem [shape: f32[1,32], index: 5, kind: input, shape index: {}]   ;;  %s867_s6 = inlined_call_operand.hbm [shape: f32[16,32], index: 6, kind: output, shape index: {}]  }
   0x1   :  { %13 = vsyncpa [#allocation4 + $0x1], 0  ;;  %s737_s21 = smov 0   ;;  %s739_s22 = smov 0  }
   0x2   :  { %s741_s23 = smov 0   ;;  %s743_s24 = smov 0  }
   0x3   :  { %s745_s25 = smov 0   ;;  %s747_s26 = smov 0  }
   0x4 LB: > { %s524_s27 = sadd.s32 4294967295, %s699_s26   ;;  %s525_s28 = sadd.s32 4294967294, %s699_s26   ;;  %s699_s26 = sphi %s747_s26, %s19_s26   ;;  %s695_s25 = sphi %s745_s25, %s874_s25   ;;  %s691_s24 = sphi %s743_s24, %s873_s24   ;;  %s687_s23 = sphi %s741_s23, %s872_s23   ;;  %s683_s22 = sphi %s739_s22, %s871_s22   ;;  %s679_s21 = sphi %s737_s21, %s870_s21  }
   0x5   : > { %s31_s29 = sadd.s32 1, %s695_s25  ;;  %s181_s30 = sadd.s32 1, %s687_s23 }
   0x6   : > { %p33_p0 = scmp.ge.s32.totalorder %s31_s29, 2  ;;  %p191_p1 = scmp.ne.s32.totalorder %s687_s23, %s683_s22 }
   0x7   : > { %p192_p2 = scmp.eq.s32.totalorder %s524_s27, 1  ;;  %p197_p3 = scmp.ne.s32.totalorder %s683_s22, %s679_s21 }
   0x8   : > { %s876_s29 = smov (%p33_p0, %s31_s29), 0  ;;  %p198_p5 = scmp.eq.s32.totalorder %s525_s28, 1 }
   0x9   : > { %p777_p4 = por %p192_p2, %p191_p1  ;;  %s178_s8 = ssub.s32 %s695_s25, %s876_s29 }
   0xa   : > { %p529_p6 = scmp.ge.s32.totalorder %s699_s26, 1  ;;  %p179_p7 = scmp.eq.s32.totalorder %s178_s8, 0 }
   0xb   : > { %p784_p8 = por %p198_p5, %p197_p3  ;;  %p251_p9 = scmp.lt.s32.totalorder %s699_s26, 3 }
   0xc   : > { %s790_s10 = scalar_select %p179_p7, %s687_s23, %s181_s30  }
   0xd   : > { %p252_p10 = pnand %p529_p6, %p251_p9 }
   0xe   : > { %p292_p11 = scmp.lt.s32.totalorder (!%p252_p10), %s691_s24, 1  ;;  %s551_s17 = sshll.u32 (!%p252_p10), %s691_s24, 3 }
   0xf   : > { %255 = sbr.rel (%p252_p10) target bundleno = 326 (0x146), region = 44  ;;  %s422_s28 = scalar_lea.hbm (!%p252_p10), %s867_s6, %s551_s17 }
  0x14   : > { %v557_v0 = vld [vmem:[%s863_s2 + $0x18] sm:$0xff]  ;;  %v556_v1 = vld [vmem:[%s863_s2 + $0x10] sm:$0xff]  ;;  %s293_s15 = scalar_select %p292_p11, %s691_s24, 1  ;;  %v555_v2 = vld [vmem:[%s863_s2 + $0x8] sm:$0xff]  ;;  %vm348_vm0 = vcmask 523264   ;;  %vm367_vm1 = vcmask 261120  }
  0x15   : > { %356 = vmatpush.bf16.msra.mxu0 %v557_v0  ;;  %v554_v3 = vld [vmem:[%s863_s2] sm:$0xff]  ;;  %v701_v15 = vmov 32.0  }
  0x16   : > { %s531_s16 = sshll.u32 %s293_s15, 3  ;;  %v614_v6 = vld [vmem:[%s864_s3] ss:$0 sm:$0xff]  ;;  %617 = vrcp.f32 %v701_v15  ;;  %s289_s15 = sand.u32 1, %s683_s22  }
  0x17   : > { %s298_s27 = scalar_lea.vmem %s861_s0, %s531_s16  ;;  %s302_s12 = scalar_lea.vmem %s862_s1, %s531_s16  ;;  %v615_v37 = vld [vmem:[%s865_s4] ss:$0 sm:$0xff] }
  0x18   : > { %v310_v4 = vld [vmem:[%s298_s27] sm:$0xff]  ;;  %s530_s16 = sshll.u32 %s289_s15, 3  ;;  %s412_s13 = scalar_lea.sflag [#allocation4], %s289_s15 }
  0x19   : > { %357 = vmatpush.bf16.msra.mxu0 %v556_v1  ;;  %v311_v5 = vpack.c.bf16 %v310_v4, %v310_v4  ;;  %v365_v8 = vld [vmem:[%s302_s12] sm:$0xff]  ;;  %s291_s24 = scalar_lea.vmem [#allocation3], %s530_s16  ;;  %s426_s12 = sshll.u32 %s422_s28, 4  ;;  %s427_s12 = int_to_ptr.hbm [resolvable:$true] %s426_s12 }
  0x1a   : > { %v616_v40 = vld [vmem:[%s866_s5] ss:$0 sm:$0xff]  ;;  %s424_s11 = sshll.u32 %s291_s24, 4  ;;  %s635_s14 = sshra.s32 %s427_s12, 4  ;;  %s425_s11 = int_to_ptr.vmem [resolvable:$true] %s424_s11  ;;  %s636_s14 = int_to_ptr.hbm [resolvable:$true] %s635_s14 }
  0x1b   : > { %s637_s17 = scalar_lea.hbm %s636_s14, 8  ;;  %s641_s16 = scalar_lea.hbm %s867_s6, 16 }
  0x1c   : > { %v618_v16 = vpop.eup %617  ;;  %p638_p12 = scmp.ne.s32.totalorder %s636_s14, %s637_s17  ;;  %p642_p1 = scmp.lt.s32.totalorder %s636_s14, %s867_s6 }
  0x1d   : > { %358 = vmatpush.bf16.msra.mxu0 %v555_v2  ;;  %v372_v17 = vmul.f32 32.0, %v618_v16  ;;  %vm376_vm2 = vweird.f32 %v618_v16  ;;  %p643_p2 = scmp.lt.s32.totalorder %s641_s16, %s637_s17 }
  0x1e   : > { %p639_p13 = pnand %p638_p12, %p777_p4 }
  0x1f   : > { %v373_v18 = vsub.f32 1.0, %v372_v17  ;;  %p644_p3 = por %p643_p2, %p642_p1 }
  0x20   : > { %p640_p0 = pneg %p639_p13 }
  0x21   : > { %359 = vmatpush.bf16.msra.mxu0 %v554_v3  ;;  %v374_v19 = vmul.f32 %v618_v16, %v373_v18 }
  0x22   : > { %p645_p5 = pnand %p644_p3, %p640_p0 }
  0x23   : > { %v375_v20 = vadd.f32 %v618_v16, %v374_v19 }
  0x24   : > { %549 = vmatmul.msk.bf16.vlgmr.msra.gmra.mxu0 %vm348_vm0, %v311_v5 }
  0x25   : > { %v377_v22 = vsel %vm376_vm2, %v618_v16, %v375_v20 }
  0xa1   : > { %v361_v7 = vpop.f32.mrf.mxu0 }
  0xa2   : > { %v362_v9 = vadd.f32 %v614_v6, %v361_v7 }
  0xa4   : > { %v366_v10 = vadd.f32 %v365_v8, %v362_v9 }
  0xa6   : > { %v368_v11 = vsel %vm367_vm1, %v366_v10, 0.0  ;;  %v379_v13 = vmul.f32 %v366_v10, %v366_v10 }
  0xa7   : > { %369 = vadd.xlane.f32.xlu0 %v368_v11 }
  0xa8   : > { %v380_v14 = vsel %vm367_vm1, %v379_v13, 0.0 }
  0xa9   : > { %v363_v12 = vpop.f32.mrf.mxu0 }
  0xaf   : > { %381 = vadd.xlane.f32.xlu0 %v380_v14 }
 0x11a   : > { %v370_v21 = vpop.xlane.xlu0 %369 }
 0x11b   : > { %v378_v23 = vmul.f32 %v377_v22, %v370_v21 }
 0x11d   : > { %v384_v25 = vmul.f32 %v378_v23, %v378_v23  ;;  %v398_v36 = vsub.f32 %v366_v10, %v378_v23 }
 0x122   : > { %v382_v24 = vpop.xlane.xlu0 %381 }
 0x123   : > { %v383_v26 = vmul.f32 %v382_v24, %v377_v22 }
 0x125   : > { %v385_v27 = vsub.f32 %v383_v26, %v384_v25 }
 0x127   : > { %v386_v28 = vmax.f32 %v385_v27, 0.0 }
 0x129   : > { %v387_v29 = vadd.f32 1e-12, %v386_v28 }
 0x12b   : > { %619 = vrsqrt.f32 %v387_v29  ;;  %vm394_vm4 = vweird.f32 %v387_v29 }
 0x131   : > { %v620_v30 = vpop.eup %619 }
 0x132   : > { %v389_v31 = vmul.f32 %v620_v30, %v387_v29  ;;  %vm395_vm3 = vweird.f32 %v620_v30 }
 0x133   : > { %vm396_vm5 = vmor %vm394_vm4, %vm395_vm3 }
 0x134   : > { %v390_v32 = vmul.f32 %v620_v30, %v389_v31 }
 0x136   : > { %v391_v33 = vmul.f32 0.5, %v390_v32 }
 0x138   : > { %v392_v34 = vsub.f32 1.5, %v391_v33 }
 0x13a   : > { %v393_v35 = vmul.f32 %v620_v30, %v392_v34 }
 0x13c   : > { %v397_v38 = vsel %vm396_vm5, %v620_v30, %v393_v35 }
 0x13d   : > { %v399_v39 = vmul.f32 %v398_v36, %v397_v38 }
 0x13f   : > { %v404_v41 = vmul.f32 %v615_v37, %v399_v39 }
 0x141   : > { %v409_v42 = vadd.f32 %v616_v40, %v404_v41 }
 0x143   : > { %410 = vst.msk [vmem:[%s291_s24] sm:$0xff] %vm367_vm1, %v409_v42 }
 0x144   : > { %648 = shalt.err (!%p645_p5)
}
 0x145   : > { %558 = dma.vmem_to_hbm [thread:$0]  (%p777_p4), %s425_s11, 128, %s427_s12, %s412_s13  }
 0x146 PF: > { %p564_p6 = scmp.ge.s32.totalorder %s699_s26, 2  ;;  %s438_s15 = sand.u32 1, %s679_s21  }
 0x147   : > { %s439_s28 = scalar_lea.sflag [#allocation4], %s438_s15 }
 0x148   : > { %p561_p7 = pnand %p564_p6, %p784_p8 }
 0x14a   : > { %p562_p9 = pneg %p561_p7 }
 0x14c   : > { %674 = dma.done.wait (%p562_p9), %s439_s28, 128  }
 0x14d   : > { %676 = vsyncadd (%p562_p9), %s439_s28, 4294967168  ;;  %s19_s26 = sadd.s32 1, %s699_s26   ;;  %s870_s21 = smov %s683_s22 }
 0x14e   : > { %p16_p10 = scmp.ge.s32.totalorder %s19_s26, 4   ;;  %s871_s22 = smov %s687_s23 }
 0x14f   : > { %s872_s23 = smov %s790_s10  ;;  %s873_s24 = smov %s695_s25 }
 0x150   : > { %s874_s25 = smov %s876_s29  ;;  %18 = sbr.rel (!%p16_p10) target bundleno = 4 (0x4), region = 85 }
 0x155   :  { %445 = vsyncpa [#allocation4], 1 }
 0x156   :  { %447 = vsyncpa [#allocation4 + $0x1], 1 }

// kernel: tpu_custom_call.1
= control target key start
LH: loop header
LB: loop body
LE: loop exit
PB: predicated region body
PF: predicated region fallthrough
CT: control target
= control target key end

     0   :  { %11 = vsyncpa [#allocation4], 0  ;;  %s861_s0 = inlined_call_operand.vmem [shape: f32[16,64], index: 0, kind: input, shape index: {}]   ;;  %s862_s1 = inlined_call_operand.vmem [shape: f32[16,32], index: 1, kind: input, shape index: {}]   ;;  %s863_s2 = inlined_call_operand.vmem [shape: bf16[64,32], index: 2, kind: input, shape index: {}]   ;;  %s864_s3 = inlined_call_operand.vmem [shape: f32[1,32], index: 3, kind: input, shape index: {}]   ;;  %s865_s4 = inlined_call_operand.vmem [shape: f32[1,32], index: 4, kind: input, shape index: {}]   ;;  %s866_s5 = inlined_call_operand.vmem [shape: f32[1,32], index: 5, kind: input, shape index: {}]   ;;  %s867_s6 = inlined_call_operand.hbm [shape: f32[16,32], index: 6, kind: output, shape index: {}]  }
   0x1   :  { %13 = vsyncpa [#allocation4 + $0x1], 0  ;;  %s737_s21 = smov 0   ;;  %s739_s22 = smov 0  }
   0x2   :  { %s741_s23 = smov 0   ;;  %s743_s24 = smov 0  }
   0x3   :  { %s745_s25 = smov 0   ;;  %s747_s26 = smov 0  }
   0x4 LB: > { %s524_s27 = sadd.s32 4294967295, %s699_s26   ;;  %s525_s28 = sadd.s32 4294967294, %s699_s26   ;;  %s699_s26 = sphi %s747_s26, %s19_s26   ;;  %s695_s25 = sphi %s745_s25, %s874_s25   ;;  %s691_s24 = sphi %s743_s24, %s873_s24   ;;  %s687_s23 = sphi %s741_s23, %s872_s23   ;;  %s683_s22 = sphi %s739_s22, %s871_s22   ;;  %s679_s21 = sphi %s737_s21, %s870_s21  }
   0x5   : > { %s31_s29 = sadd.s32 1, %s695_s25  ;;  %s181_s30 = sadd.s32 1, %s687_s23 }
   0x6   : > { %p33_p0 = scmp.ge.s32.totalorder %s31_s29, 2  ;;  %p191_p1 = scmp.ne.s32.totalorder %s687_s23, %s683_s22 }
   0x7   : > { %p192_p2 = scmp.eq.s32.totalorder %s524_s27, 1  ;;  %p197_p3 = scmp.ne.s32.totalorder %s683_s22, %s679_s21 }
   0x8   : > { %s876_s29 = smov (%p33_p0, %s31_s29), 0  ;;  %p198_p5 = scmp.eq.s32.totalorder %s525_s28, 1 }
   0x9   : > { %p777_p4 = por %p192_p2, %p191_p1  ;;  %s178_s8 = ssub.s32 %s695_s25, %s876_s29 }
   0xa   : > { %p529_p6 = scmp.ge.s32.totalorder %s699_s26, 1  ;;  %p179_p7 = scmp.eq.s32.totalorder %s178_s8, 0 }
   0xb   : > { %p784_p8 = por %p198_p5, %p197_p3  ;;  %p251_p9 = scmp.lt.s32.totalorder %s699_s26, 3 }
   0xc   : > { %s790_s10 = scalar_select %p179_p7, %s687_s23, %s181_s30  }
   0xd   : > { %p252_p10 = pnand %p529_p6, %p251_p9 }
   0xe   : > { %p292_p11 = scmp.lt.s32.totalorder (!%p252_p10), %s691_s24, 1  ;;  %s551_s17 = sshll.u32 (!%p252_p10), %s691_s24, 3 }
   0xf   : > { %255 = sbr.rel (%p252_p10) target bundleno = 326 (0x146), region = 44  ;;  %s422_s28 = scalar_lea.hbm (!%p252_p10), %s867_s6, %s551_s17 }
  0x14   : > { %v557_v0 = vld [vmem:[%s863_s2 + $0x18] sm:$0xff]  ;;  %v556_v1 = vld [vmem:[%s863_s2 + $0x10] sm:$0xff]  ;;  %s293_s15 = scalar_select %p292_p11, %s691_s24, 1  ;;  %v555_v2 = vld [vmem:[%s863_s2 + $0x8] sm:$0xff]  ;;  %vm348_vm0 = vcmask 523264   ;;  %vm367_vm1 = vcmask 261120  }
  0x15   : > { %356 = vmatpush.bf16.msra.mxu0 %v557_v0  ;;  %v554_v3 = vld [vmem:[%s863_s2] sm:$0xff]  ;;  %v701_v15 = vmov 32.0  }
  0x16   : > { %s531_s16 = sshll.u32 %s293_s15, 3  ;;  %v614_v6 = vld [vmem:[%s864_s3] ss:$0 sm:$0xff]  ;;  %617 = vrcp.f32 %v701_v15  ;;  %s289_s15 = sand.u32 1, %s683_s22  }
  0x17   : > { %s298_s27 = scalar_lea.vmem %s861_s0, %s531_s16  ;;  %s302_s12 = scalar_lea.vmem %s862_s1, %s531_s16  ;;  %v615_v37 = vld [vmem:[%s865_s4] ss:$0 sm:$0xff] }
  0x18   : > { %v310_v4 = vld [vmem:[%s298_s27] sm:$0xff]  ;;  %s530_s16 = sshll.u32 %s289_s15, 3  ;;  %s412_s13 = scalar_lea.sflag [#allocation4], %s289_s15 }
  0x19   : > { %357 = vmatpush.bf16.msra.mxu0 %v556_v1  ;;  %v311_v5 = vpack.c.bf16 %v310_v4, %v310_v4  ;;  %v365_v8 = vld [vmem:[%s302_s12] sm:$0xff]  ;;  %s291_s24 = scalar_lea.vmem [#allocation3], %s530_s16  ;;  %s426_s12 = sshll.u32 %s422_s28, 4  ;;  %s427_s12 = int_to_ptr.hbm [resolvable:$true] %s426_s12 }
  0x1a   : > { %v616_v40 = vld [vmem:[%s866_s5] ss:$0 sm:$0xff]  ;;  %s424_s11 = sshll.u32 %s291_s24, 4  ;;  %s635_s14 = sshra.s32 %s427_s12, 4  ;;  %s425_s11 = int_to_ptr.vmem [resolvable:$true] %s424_s11  ;;  %s636_s14 = int_to_ptr.hbm [resolvable:$true] %s635_s14 }
  0x1b   : > { %s637_s17 = scalar_lea.hbm %s636_s14, 8  ;;  %s641_s16 = scalar_lea.hbm %s867_s6, 16 }
  0x1c   : > { %v618_v16 = vpop.eup %617  ;;  %p638_p12 = scmp.ne.s32.totalorder %s636_s14, %s637_s17  ;;  %p642_p1 = scmp.lt.s32.totalorder %s636_s14, %s867_s6 }
  0x1d   : > { %358 = vmatpush.bf16.msra.mxu0 %v555_v2  ;;  %v372_v17 = vmul.f32 32.0, %v618_v16  ;;  %vm376_vm2 = vweird.f32 %v618_v16  ;;  %p643_p2 = scmp.lt.s32.totalorder %s641_s16, %s637_s17 }
  0x1e   : > { %p639_p13 = pnand %p638_p12, %p777_p4 }
  0x1f   : > { %v373_v18 = vsub.f32 1.0, %v372_v17  ;;  %p644_p3 = por %p643_p2, %p642_p1 }
  0x20   : > { %p640_p0 = pneg %p639_p13 }
  0x21   : > { %359 = vmatpush.bf16.msra.mxu0 %v554_v3  ;;  %v374_v19 = vmul.f32 %v618_v16, %v373_v18 }
  0x22   : > { %p645_p5 = pnand %p644_p3, %p640_p0 }
  0x23   : > { %v375_v20 = vadd.f32 %v618_v16, %v374_v19 }
  0x24   : > { %549 = vmatmul.msk.bf16.vlgmr.msra.gmra.mxu0 %vm348_vm0, %v311_v5 }
  0x25   : > { %v377_v22 = vsel %vm376_vm2, %v618_v16, %v375_v20 }
  0xa1   : > { %v361_v7 = vpop.f32.mrf.mxu0 }
  0xa2   : > { %v362_v9 = vadd.f32 %v614_v6, %v361_v7 }
  0xa4   : > { %v366_v10 = vadd.f32 %v365_v8, %v362_v9 }
  0xa6   : > { %v368_v11 = vsel %vm367_vm1, %v366_v10, 0.0  ;;  %v379_v13 = vmul.f32 %v366_v10, %v366_v10 }
  0xa7   : > { %369 = vadd.xlane.f32.xlu0 %v368_v11 }
  0xa8   : > { %v380_v14 = vsel %vm367_vm1, %v379_v13, 0.0 }
  0xa9   : > { %v363_v12 = vpop.f32.mrf.mxu0 }
  0xaf   : > { %381 = vadd.xlane.f32.xlu0 %v380_v14 }
 0x11a   : > { %v370_v21 = vpop.xlane.xlu0 %369 }
 0x11b   : > { %v378_v23 = vmul.f32 %v377_v22, %v370_v21 }
 0x11d   : > { %v384_v25 = vmul.f32 %v378_v23, %v378_v23  ;;  %v398_v36 = vsub.f32 %v366_v10, %v378_v23 }
 0x122   : > { %v382_v24 = vpop.xlane.xlu0 %381 }
 0x123   : > { %v383_v26 = vmul.f32 %v382_v24, %v377_v22 }
 0x125   : > { %v385_v27 = vsub.f32 %v383_v26, %v384_v25 }
 0x127   : > { %v386_v28 = vmax.f32 %v385_v27, 0.0 }
 0x129   : > { %v387_v29 = vadd.f32 1e-12, %v386_v28 }
 0x12b   : > { %619 = vrsqrt.f32 %v387_v29  ;;  %vm394_vm4 = vweird.f32 %v387_v29 }
 0x131   : > { %v620_v30 = vpop.eup %619 }
 0x132   : > { %v389_v31 = vmul.f32 %v620_v30, %v387_v29  ;;  %vm395_vm3 = vweird.f32 %v620_v30 }
 0x133   : > { %vm396_vm5 = vmor %vm394_vm4, %vm395_vm3 }
 0x134   : > { %v390_v32 = vmul.f32 %v620_v30, %v389_v31 }
 0x136   : > { %v391_v33 = vmul.f32 0.5, %v390_v32 }
 0x138   : > { %v392_v34 = vsub.f32 1.5, %v391_v33 }
 0x13a   : > { %v393_v35 = vmul.f32 %v620_v30, %v392_v34 }
 0x13c   : > { %v397_v38 = vsel %vm396_vm5, %v620_v30, %v393_v35 }
 0x13d   : > { %v399_v39 = vmul.f32 %v398_v36, %v397_v38 }
 0x13f   : > { %v404_v41 = vmul.f32 %v615_v37, %v399_v39 }
 0x141   : > { %v409_v42 = vadd.f32 %v616_v40, %v404_v41 }
 0x143   : > { %410 = vst.msk [vmem:[%s291_s24] sm:$0xff] %vm367_vm1, %v409_v42 }
 0x144   : > { %648 = shalt.err (!%p645_p5)
}
 0x145   : > { %558 = dma.vmem_to_hbm [thread:$0]  (%p777_p4), %s425_s11, 128, %s427_s12, %s412_s13  }
 0x146 PF: > { %p564_p6 = scmp.ge.s32.totalorder %s699_s26, 2  ;;  %s438_s15 = sand.u32 1, %s679_s21  }
 0x147   : > { %s439_s28 = scalar_lea.sflag [#allocation4], %s438_s15 }
 0x148   : > { %p561_p7 = pnand %p564_p6, %p784_p8 }
 0x14a   : > { %p562_p9 = pneg %p561_p7 }
 0x14c   : > { %674 = dma.done.wait (%p562_p9), %s439_s28, 128  }
 0x14d   : > { %676 = vsyncadd (%p562_p9), %s439_s28, 4294967168  ;;  %s19_s26 = sadd.s32 1, %s699_s26   ;;  %s870_s21 = smov %s683_s22 }
 0x14e   : > { %p16_p10 = scmp.ge.s32.totalorder %s19_s26, 4   ;;  %s871_s22 = smov %s687_s23 }
 0x14f   : > { %s872_s23 = smov %s790_s10  ;;  %s873_s24 = smov %s695_s25 }
 0x150   : > { %s874_s25 = smov %s876_s29  ;;  %18 = sbr.rel (!%p16_p10) target bundleno = 4 (0x4), region = 85 }
 0x155   :  { %445 = vsyncpa [#allocation4], 1 }
 0x156   :  { %447 = vsyncpa [#allocation4 + $0x1], 1 }

</bundles_post_ra>
